<compile_context>
chip_gen: v6e
topology: v6e:2x2x1
jax: 0.10.0
libtpu: 0.0.40
codegen_flags: <defaults>
</compile_context>

<pallas_src>
import functools

import jax
import jax.numpy as jnp
from jax.experimental import pallas as pl
from jax.experimental.pallas import tpu as pltpu


def _round_up(v, m):
    return ((v + m - 1) // m) * m


def _tpu_vmem_bytes():
    # Per-TensorCore VMEM (128 MiB v5e/v6e, 64 MiB v7x).  Conservative fallback.
    try:
        cap = int(pltpu.get_tpu_info().vmem_capacity_bytes)
    except Exception:
        cap = 64 * 1024 * 1024
    return max(32 * 1024 * 1024, min(cap, 128 * 1024 * 1024))


def _tpu_num_tensorcores():
    # The grid is a serial loop on 1-TC chips (v5e/v6e); splitting only pays
    # off when there are multiple TensorCores sharing the "parallel" axis.
    try:
        kind = jax.devices()[0].device_kind.lower()
    except Exception:
        return 1
    return 2 if any(t in kind for t in ("v7", "v5p", "v4")) else 1


def _lucas_kernel(x_ref, c_ref, b_ref, o_ref, t_ref, *, degree, input_dim):
    # x_ref: (TN, I)        row tile of the flattened input
    # c_ref: (D*I, O)       fused coeffs for degrees 1..D (pre-cast to matmul dtype)
    # b_ref: (1, O)         bias from the constant L0 = 2 term (f32)
    # o_ref: (TN, O)        output tile
    # t_ref: (TN, D*I)      VMEM scratch holding the Lucas terms (matmul dtype)
    x = jnp.tanh(x_ref[...].astype(jnp.float32))  # recurrence kept in f32 (v5e-safe)
    # TODO(synk): if degree grows large and EUP/VALU become binding, run the
    # recurrence in bf16 on v6e/v7x (lane occupancy fix) while keeping f32 on v5e.

    # Stream the Lucas terms for degrees 1..D into the scratch at static
    # offsets (keeps peak live data to one term; no lane-axis concat).
    t_ref[:, :input_dim] = x.astype(t_ref.dtype)      # L1 = x
    l_m2 = jnp.full_like(x, 2.0)                       # L0 = 2
    l_m1 = x
    for d in range(2, degree + 1):                     # L_d = x * L_{d-1} + L_{d-2}
        l_d = x * l_m1 + l_m2
        t_ref[:, (d - 1) * input_dim:d * input_dim] = l_d.astype(t_ref.dtype)
        l_m2, l_m1 = l_m1, l_d

    # Single fused matmul over K = degree * input_dim; f32 accumulation.
    acc = jnp.dot(t_ref[...], c_ref[...], preferred_element_type=jnp.float32)
    o_ref[...] = (acc + b_ref[...]).astype(o_ref.dtype)


def prepare_lucas_coeffs(lucas_coeffs, degree, *, matmul_dtype=jnp.float32):
    """Parameter-only preprocessing.  Depends only on the weights, so callers
    can hoist it out of the forward path (pass the result via `prepared=`)."""
    input_dim, output_dim, _ = lucas_coeffs.shape
    c32 = lucas_coeffs.astype(jnp.float32)
    # L0 = 2 folded into a per-output bias: no MXU / coeff-DMA work for it.
    bias = (2.0 * jnp.sum(c32[:, :, 0], axis=0)).reshape(1, output_dim)
    if degree >= 1:
        # Degrees 1..D fused into one (D*I, O) operand; d-major / i-minor order
        # matches the scratch layout written by the kernel.
        c_fused = jnp.transpose(c32[:, :, 1:], (2, 0, 1)).reshape(
            degree * input_dim, output_dim).astype(matmul_dtype)
    else:
        c_fused = None
    return c_fused, bias


def lucas_polynomials(x, lucas_coeffs, degree, *, matmul_dtype=jnp.float32,
                      prepared=None):
    """Forward pass matching the PyTorch LucasPolynomials module.

    x:            (..., input_dim)
    lucas_coeffs: (input_dim, output_dim, degree + 1)
    returns:      (..., output_dim)
    """
    input_dim, output_dim, _ = lucas_coeffs.shape
    orig_shape = x.shape

    xf = x.reshape(-1, input_dim)
    n = xf.shape[0]

    if prepared is None:
        prepared = prepare_lucas_coeffs(lucas_coeffs, degree,
                                        matmul_dtype=matmul_dtype)
    c_fused, bias = prepared

    if degree == 0:
        # Output is constant per row (y = 2 * sum_i coeffs[i, :, 0]): no matmul,
        # no coefficient DMA, no kernel needed.
        y = jnp.broadcast_to(bias.astype(x.dtype), (n, output_dim))
        return y.reshape(*orig_shape[:-1], output_dim)

    k_dim = degree * input_dim

    # ---- conditional lane padding of the output -----------------------------
    # Exact-width output blocks avoid 128-lane write amplification + the
    # post-kernel column slice; only pad when the pad is cheap (O%128 >= 112).
    rem = output_dim % 128
    pad_lanes = (rem != 0) and (rem >= 112)
    o_out = _round_up(output_dim, 128) if pad_lanes else output_dim
    if pad_lanes:
        c_fused = jnp.pad(c_fused, ((0, 0), (0, o_out - output_dim)))
        bias = jnp.pad(bias, ((0, 0), (0, o_out - output_dim)))

    # ---- tile sizing from per-core VMEM -------------------------------------
    vmem_cap = _tpu_vmem_bytes()
    vmem_limit = (vmem_cap * 13) // 16          # headroom for Mosaic scratch
    budget = (vmem_limit * 3) // 4              # tiling budget under the limit

    xd = jnp.dtype(x.dtype).itemsize
    md = jnp.dtype(matmul_dtype).itemsize
    coeff_bytes = k_dim * o_out * md
    single_buffer_coeffs = coeff_bytes >= 4 * 1024 * 1024
    coeff_bufs = 1 if single_buffer_coeffs else 2
    fixed = coeff_bufs * coeff_bytes + 2 * o_out * 4          # coeffs + bias
    per_row = 2 * input_dim * xd + 2 * o_out * xd + k_dim * md  # x, out, scratch
    # TODO(synk): tile the K (= degree*input_dim) axis if the fused coeff block
    # ever exceeds the VMEM budget on its own.

    tn_cap = max(8, min(8192, (budget - fixed) // max(per_row, 1)))
    tn_cap = max(8, (tn_cap // 8) * 8)
    tn = min(tn_cap, _round_up(n, 8))

    # Multi-TC chips only (v7x): make the grid a multiple of the core count so
    # the "parallel" row axis shards evenly; single-TC chips keep one max tile.
    num_tc = _tpu_num_tensorcores()
    if num_tc > 1 and n > 8 * num_tc:
        grid = pl.cdiv(n, tn)
        if grid < num_tc or grid % num_tc:
            grid = _round_up(max(grid, num_tc), num_tc)
            tn = max(8, _round_up(pl.cdiv(n, grid), 8))
    grid = pl.cdiv(n, tn)

    # Grid-invariant coefficient block: single-buffer it when it is large
    # (halves its VMEM footprint; matters most on v7x's 64 MiB VMEM).
    coeff_kwargs = {}
    if single_buffer_coeffs:
        coeff_kwargs = dict(pipeline_mode=pl.Buffered(1))

    out = pl.pallas_call(
        functools.partial(_lucas_kernel, degree=degree, input_dim=input_dim),
        out_shape=jax.ShapeDtypeStruct((n, o_out), x.dtype),
        grid=(int(grid),),
        in_specs=[
            pl.BlockSpec((tn, input_dim), lambda i: (i, 0)),
            pl.BlockSpec((k_dim, o_out), lambda i: (0, 0), **coeff_kwargs),
            pl.BlockSpec((1, o_out), lambda i: (0, 0)),
        ],
        out_specs=pl.BlockSpec((tn, o_out), lambda i: (i, 0)),
        scratch_shapes=[pltpu.VMEM((tn, k_dim), matmul_dtype)],
        compiler_params=pltpu.CompilerParams(
            dimension_semantics=("parallel",),
            vmem_limit_bytes=int(vmem_limit),
        ),
    )(xf, c_fused, bias)

    if pad_lanes:
        out = out[:, :output_dim]
    return out.reshape(*orig_shape[:-1], output_dim)


def _reference(x, lucas_coeffs, degree):
    """Plain-JAX reference mirroring the PyTorch forward."""
    input_dim, output_dim, _ = lucas_coeffs.shape
    orig_shape = x.shape
    xf = jnp.tanh(x.reshape(-1, input_dim).astype(jnp.float32))
    terms = [jnp.full_like(xf, 2.0)]
    if degree > 0:
        terms.append(xf)
        for _ in range(2, degree + 1):
            terms.append(xf * terms[-1] + terms[-2])
    lucas = jnp.stack(terms, axis=-1)  # (N, I, D+1)
    y = jnp.einsum("bid,iod->bo", lucas, lucas_coeffs.astype(jnp.float32))
    return y.reshape(*orig_shape[:-1], output_dim).astype(x.dtype)


if __name__ == "__main__":
    input_dim = 16
    output_dim = 32
    degree = 4

    key = jax.random.PRNGKey(0)
    kx, kc, kx2 = jax.random.split(key, 3)

    # deterministic parameter init: normal(0, 1/(input_dim*(degree+1)))
    std = 1.0 / (input_dim * (degree + 1))
    lucas_coeffs = std * jax.random.normal(
        kc, (input_dim, output_dim, degree + 1), dtype=jnp.float32)

    # 4-D input (a, b, c, input_dim), like the PyTorch 4-D branch.
    x = jax.random.normal(kx, (2, 4, 8, input_dim), dtype=jnp.float32)
    y = jax.block_until_ready(lucas_polynomials(x, lucas_coeffs, degree))
    y_ref = _reference(x, lucas_coeffs, degree)
    assert y.shape == (2, 4, 8, output_dim)
    assert jnp.allclose(y, y_ref, atol=1e-5, rtol=1e-5)

    # 2-D input with a row count that is not a multiple of the tile size:
    # exercises the no-row-padding / partial-boundary-block path, plus the
    # hoisted (prepared=) coefficient preprocessing.
    prepared = prepare_lucas_coeffs(lucas_coeffs, degree)
    x2 = jax.random.normal(kx2, (37, input_dim), dtype=jnp.float32)
    y2 = jax.block_until_ready(
        lucas_polynomials(x2, lucas_coeffs, degree, prepared=prepared))
    y2_ref = _reference(x2, lucas_coeffs, degree)
    assert y2.shape == (37, output_dim)
    assert jnp.allclose(y2, y2_ref, atol=1e-5, rtol=1e-5)

    print("KERNEL_OK")
</pallas_src>

<mosaic_0001>
module attributes {stable_mosaic.version = 11 : i64} {
  func.func @_lucas_kernel(%arg0: i32, %arg1: memref<64x16xf32, #tpu.memory_space<vmem>>, %arg2: memref<64x32xf32, #tpu.memory_space<vmem>>, %arg3: memref<1x32xf32, #tpu.memory_space<vmem>>, %arg4: memref<64x32xf32, #tpu.memory_space<vmem>>, %arg5: memref<64x64xf32, #tpu.memory_space<vmem>>) attributes {dimension_semantics = [#tpu.dimension_semantics<parallel>], iteration_bounds = array<i64: 1>, scalar_prefetch = 0 : i64, scratch_operands = 1 : i64, tpu.core_type = #tpu.core_type<tc>, window_params = [{transform_indices = @transform_0, window_bounds = array<i64: 64, 16>}, {pipeline_mode = #tpu.pipeline_mode<synchronous>, transform_indices = @transform_1, window_bounds = array<i64: 64, 32>}, {pipeline_mode = #tpu.pipeline_mode<synchronous>, transform_indices = @transform_2, window_bounds = array<i64: 1, 32>}, {transform_indices = @transform_3, window_bounds = array<i64: 64, 32>}]} {
    %c0 = arith.constant 0 : index
    %c0_0 = arith.constant 0 : index
    %0 = vector.load %arg1[%c0, %c0_0] : memref<64x16xf32, #tpu.memory_space<vmem>>, vector<64x16xf32>
    %1 = math.tanh %0 : vector<64x16xf32>
    %c0_1 = arith.constant 0 : index
    %c0_2 = arith.constant 0 : index
    %2 = vector.load %arg5[%c0_1, %c0_2] : memref<64x64xf32, #tpu.memory_space<vmem>>, vector<64x16xf32>
    tpu.vector_store %arg5[%c0_1, %c0_2], %1 {strides = array<i32>} : memref<64x64xf32, #tpu.memory_space<vmem>>, vector<64x16xf32>,
    %cst = arith.constant 2.000000e+00 : f32
    %3 = vector.broadcast %cst : f32 to vector<64x16xf32>
    %4 = arith.mulf %1, %1 : vector<64x16xf32>
    %5 = arith.addf %4, %3 : vector<64x16xf32>
    %c0_3 = arith.constant 0 : index
    %c16 = arith.constant 16 : index
    %6 = vector.load %arg5[%c0_3, %c16] : memref<64x64xf32, #tpu.memory_space<vmem>>, vector<64x16xf32>
    tpu.vector_store %arg5[%c0_3, %c16], %5 {strides = array<i32>} : memref<64x64xf32, #tpu.memory_space<vmem>>, vector<64x16xf32>,
    %7 = arith.mulf %1, %5 : vector<64x16xf32>
    %8 = arith.addf %7, %1 : vector<64x16xf32>
    %c0_4 = arith.constant 0 : index
    %c32 = arith.constant 32 : index
    %9 = vector.load %arg5[%c0_4, %c32] : memref<64x64xf32, #tpu.memory_space<vmem>>, vector<64x16xf32>
    tpu.vector_store %arg5[%c0_4, %c32], %8 {strides = array<i32>} : memref<64x64xf32, #tpu.memory_space<vmem>>, vector<64x16xf32>,
    %10 = arith.mulf %1, %8 : vector<64x16xf32>
    %11 = arith.addf %10, %5 : vector<64x16xf32>
    %c0_5 = arith.constant 0 : index
    %c48 = arith.constant 48 : index
    %12 = vector.load %arg5[%c0_5, %c48] : memref<64x64xf32, #tpu.memory_space<vmem>>, vector<64x16xf32>
    tpu.vector_store %arg5[%c0_5, %c48], %11 {strides = array<i32>} : memref<64x64xf32, #tpu.memory_space<vmem>>, vector<64x16xf32>,
    %c0_6 = arith.constant 0 : index
    %c0_7 = arith.constant 0 : index
    %13 = vector.load %arg5[%c0_6, %c0_7] : memref<64x64xf32, #tpu.memory_space<vmem>>, vector<64x64xf32>
    %c0_8 = arith.constant 0 : index
    %c0_9 = arith.constant 0 : index
    %14 = vector.load %arg2[%c0_8, %c0_9] : memref<64x32xf32, #tpu.memory_space<vmem>>, vector<64x32xf32>
    %cst_10 = arith.constant dense<0.000000e+00> : vector<64x32xf32>
    %15 = tpu.matmul %13, %14, %cst_10 {dimension_numbers = #tpu.dot_dimension_numbers<[1], [0], [0], [1], [0, 0, 1, 1], [], []>} : vector<64x64xf32>, vector<64x32xf32>, vector<64x32xf32> -> vector<64x32xf32>
    %c0_11 = arith.constant 0 : index
    %c0_12 = arith.constant 0 : index
    %16 = vector.load %arg3[%c0_11, %c0_12] : memref<1x32xf32, #tpu.memory_space<vmem>>, vector<1x32xf32>
    %17 = vector.broadcast %16 : vector<1x32xf32> to vector<64x32xf32>
    %18 = arith.addf %15, %17 : vector<64x32xf32>
    %c0_13 = arith.constant 0 : index
    %c0_14 = arith.constant 0 : index
    %19 = vector.load %arg4[%c0_13, %c0_14] : memref<64x32xf32, #tpu.memory_space<vmem>>, vector<64x32xf32>
    tpu.vector_store %arg4[%c0_13, %c0_14], %18 {strides = array<i32>} : memref<64x32xf32, #tpu.memory_space<vmem>>, vector<64x32xf32>,
    return
  }
  func.func @transform_0(%arg0: i32) -> (i32, i32) {
    %c0_i32 = arith.constant 0 : i32
    %c0_i32_0 = arith.constant 0 : i32
    return %arg0, %c0_i32 : i32, i32
  }
  func.func @transform_1(%arg0: i32) -> (i32, i32) {
    %c0_i32 = arith.constant 0 : i32
    %c0_i32_0 = arith.constant 0 : i32
    %c0_i32_1 = arith.constant 0 : i32
    return %c0_i32, %c0_i32_0 : i32, i32
  }
  func.func @transform_2(%arg0: i32) -> (i32, i32) {
    %c0_i32 = arith.constant 0 : i32
    %c0_i32_0 = arith.constant 0 : i32
    %c0_i32_1 = arith.constant 0 : i32
    return %c0_i32, %c0_i32_0 : i32, i32
  }
  func.func @transform_3(%arg0: i32) -> (i32, i32) {
    %c0_i32 = arith.constant 0 : i32
    %c0_i32_0 = arith.constant 0 : i32
    return %arg0, %c0_i32 : i32, i32
  }
}

</mosaic_0001>

<bundles_post_ra>
// kernel: tpu_custom_call.1
= control target key start
LH: loop header
LB: loop body
LE: loop exit
PB: predicated region body
PF: predicated region fallthrough
CT: control target
= control target key end

     0   :  { %vm30_vm0 = vcmask 130048   ;;  %s465_s9 = smov 32   ;;  %s466_s16 = smov 48   ;;  %vm87_vm1 = vcmask 261248   ;;  %vm144_vm2 = vcmask 392448   ;;  %vm201_vm3 = vcmask 523648   ;;  %s725_s0 = inlined_call_operand.vmem [shape: f32[64,16], index: 0, kind: input, shape index: {}]   ;;  %s726_s1 = inlined_call_operand.vmem [shape: f32[64,32], index: 1, kind: input, shape index: {}]   ;;  %s727_s2 = inlined_call_operand.vmem [shape: f32[1,32], index: 2, kind: input, shape index: {}]   ;;  %s728_s3 = inlined_call_operand.vmem [shape: f32[64,32], index: 3, kind: output, shape index: {}]  }
   0x1   :  { %v15_v0 = vld [vmem:[%s725_s0 + $0x8] sm:$0xff]  ;;  %v14_v1 = vld [vmem:[%s725_s0] sm:$0xff]  ;;  %v20_v4 = vld [vmem:[%s725_s0 + $0x30] sm:$0xff]  ;;  %vm233_vm4 = vcmask 523264   ;;  %vm363_vm5 = vcmask 261120  }
   0x2   :  { %v19_v2 = vld [vmem:[%s725_s0 + $0x28] sm:$0xff]  ;;  %448 = vtanh.f32 %v15_v0  ;;  %v18_v3 = vld [vmem:[%s725_s0 + $0x20] sm:$0xff]  ;;  %v16_v5 = vld [vmem:[%s725_s0 + $0x10] sm:$0xff] }
   0x3   :  { %450 = vtanh.f32 %v14_v1  ;;  %v21_v6 = vld [vmem:[%s725_s0 + $0x38] sm:$0xff]  ;;  %v224_v33 = vld [vmem:[%s726_s1 + $0x30] sm:$0xff]  ;;  %v223_v36 = vld [vmem:[%s726_s1 + $0x28] sm:$0xff] }
   0x4   :  { %452 = vtanh.f32 %v19_v2  ;;  %v17_v7 = vld [vmem:[%s725_s0 + $0x18] sm:$0xff]  ;;  %s464_s0 = smov 16   ;;  %v222_v41 = vld [vmem:[%s726_s1 + $0x20] sm:$0xff]  ;;  %v220_v47 = vld [vmem:[%s726_s1 + $0x10] sm:$0xff] }
   0x5   :  { %454 = vtanh.f32 %v18_v3  ;;  %v225_v30 = vld [vmem:[%s726_s1 + $0x38] sm:$0xff]  ;;  %v219_v52 = vld [vmem:[%s726_s1 + $0x8] sm:$0xff]  ;;  %v218_v55 = vld [vmem:[%s726_s1] sm:$0xff] }
   0x6   :  { %456 = vtanh.f32 %v20_v4  ;;  %401 = vmatprep.subr.mxu0 %v225_v30  ;;  %429 = vmatprep.subr.mxu1 %v225_v30  ;;  %v221_v44 = vld [vmem:[%s726_s1 + $0x18] sm:$0xff] }
   0x7   :  { %458 = vtanh.f32 %v16_v5  ;;  %402 = vmatpush3.msra.mxu0 %v225_v30  ;;  %437 = vmatpush3.msra.mxu1 %v225_v30 }
   0x8   :  { %460 = vtanh.f32 %v21_v6  ;;  %403 = vmatprep.subr.mxu0 %v224_v33  ;;  %430 = vmatprep.subr.mxu1 %v224_v33 }
   0x9   :  { %462 = vtanh.f32 %v17_v7  ;;  %404 = vmatpush3.msra.mxu0 %v224_v33  ;;  %438 = vmatpush3.msra.mxu1 %v224_v33 }
   0xa   :  { %405 = vmatprep.subr.mxu0 %v223_v36  ;;  %431 = vmatprep.subr.mxu1 %v223_v36 }
   0xb   :  { %406 = vmatpush3.msra.mxu0 %v223_v36  ;;  %439 = vmatpush3.msra.mxu1 %v223_v36 }
   0xc   :  { %407 = vmatprep.subr.mxu0 %v222_v41  ;;  %432 = vmatprep.subr.mxu1 %v222_v41 }
   0xd   :  { %408 = vmatpush3.msra.mxu0 %v222_v41  ;;  %440 = vmatpush3.msra.mxu1 %v222_v41 }
   0xe   :  { %409 = vmatprep.subr.mxu0 %v221_v44  ;;  %433 = vmatprep.subr.mxu1 %v221_v44 }
   0xf   :  { %v511_v8 = vpop.eup %448  ;;  %410 = vmatpush3.msra.mxu0 %v221_v44  ;;  %441 = vmatpush3.msra.mxu1 %v221_v44 }
  0x10   :  { %v513_v9 = vpop.eup %450  ;;  %v40_v10 = vmul.f32 %v511_v8, %v511_v8  ;;  %32 = vst.msk [vmem:[#allocation2 + $0x8] sm:$0xff] %vm30_vm0, %v511_v8  ;;  %411 = vmatprep.subr.mxu0 %v220_v47  ;;  %434 = vmatprep.subr.mxu1 %v220_v47 }
  0x11   :  { %v519_v11 = vpop.eup %452  ;;  %v39_v12 = vmul.f32 %v513_v9, %v513_v9  ;;  %31 = vst.msk [vmem:[#allocation2] sm:$0xff] %vm30_vm0, %v513_v9  ;;  %412 = vmatpush3.msra.mxu0 %v220_v47  ;;  %442 = vmatpush3.msra.mxu1 %v220_v47 }
  0x12   :  { %v455_v13 = vpop.eup %454  ;;  %v525_v14 = vadd.f32 2.0, %v40_v10  ;;  %v44_v15 = vmul.f32 %v519_v11, %v519_v11  ;;  %36 = vst.msk [vmem:[#allocation2 + $0x28] sm:$0xff] %vm30_vm0, %v519_v11  ;;  %413 = vmatprep.subr.mxu0 %v219_v52  ;;  %435 = vmatprep.subr.mxu1 %v219_v52 }
  0x13   :  { %v531_v16 = vpop.eup %456  ;;  %v533_v17 = vadd.f32 2.0, %v39_v12  ;;  %v43_v18 = vmul.f32 %v455_v13, %v455_v13  ;;  %35 = vst.msk [vmem:[#allocation2 + $0x20] sm:$0xff] %vm30_vm0, %v455_v13  ;;  %414 = vmatpush3.msra.mxu0 %v219_v52  ;;  %443 = vmatpush3.msra.mxu1 %v219_v52 }
  0x14   :  { %v536_v19 = vpop.eup %458  ;;  %65 = vrot.lane.b32.xlu1 %v525_v14, %s464_s0  ;;  %v540_v20 = vadd.f32 2.0, %v44_v15  ;;  %v45_v21 = vmul.f32 %v531_v16, %v531_v16  ;;  %37 = vst.msk [vmem:[#allocation2 + $0x30] sm:$0xff] %vm30_vm0, %v531_v16  ;;  %v97_v40 = vmul.f32 %v511_v8, %v525_v14  ;;  %415 = vmatprep.subr.mxu0 %v218_v55 }
  0x15   :  { %v546_v22 = vpop.eup %460  ;;  %63 = vrot.lane.b32.xlu0 %v533_v17, %s464_s0  ;;  %v51_v23 = vadd.f32 2.0, %v43_v18  ;;  %v41_v24 = vmul.f32 %v536_v19, %v536_v19  ;;  %33 = vst.msk [vmem:[#allocation2 + $0x10] sm:$0xff] %vm30_vm0, %v536_v19  ;;  %v96_v35 = vmul.f32 %v513_v9, %v533_v17  ;;  %436 = vmatprep.subr.mxu1 %v218_v55 }
  0x16   :  { %v554_v25 = vpop.eup %462  ;;  %38 = vst.msk [vmem:[#allocation2 + $0x38] sm:$0xff] %vm30_vm0, %v546_v22  ;;  %v562_v26 = vadd.f32 2.0, %v45_v21  ;;  %v46_v27 = vmul.f32 %v546_v22, %v546_v22  ;;  %v101_v38 = vmul.f32 %v519_v11, %v540_v20  ;;  %v105_v45 = vadd.f32 %v511_v8, %v97_v40  ;;  %416 = vmatpush3.msra.mxu0 %v218_v55  ;;  %v376_v40 = vld [vmem:[%s727_s2] ss:$0 sm:$0xff] }
  0x17   :  { %34 = vst.msk [vmem:[#allocation2 + $0x18] sm:$0xff] %vm30_vm0, %v554_v25  ;;  %v567_v28 = vadd.f32 2.0, %v41_v24  ;;  %v42_v29 = vmul.f32 %v554_v25, %v554_v25  ;;  %v100_v32 = vmul.f32 %v455_v13, %v51_v23  ;;  %v104_v39 = vadd.f32 %v513_v9, %v96_v35  ;;  %444 = vmatpush3.msra.mxu1 %v218_v55 }
  0x18   :  { %73 = vrot.lane.b32.xlu1 %v540_v20, %s464_s0  ;;  %v576_v31 = vadd.f32 2.0, %v46_v27  ;;  %v109_v42 = vadd.f32 %v519_v11, %v101_v38  ;;  %v154_v51 = vmul.f32 %v511_v8, %v105_v45  ;;  %v102_v54 = vmul.f32 %v531_v16, %v562_v26 }
  0x19   :  { %71 = vrot.lane.b32.xlu0 %v51_v23, %s464_s0  ;;  %v583_v34 = vadd.f32 2.0, %v42_v29  ;;  %v108_v37 = vadd.f32 %v455_v13, %v100_v32  ;;  %v153_v46 = vmul.f32 %v513_v9, %v104_v39  ;;  %v98_v57 = vmul.f32 %v536_v19, %v567_v28 }
  0x1a   :  { %v158_v49 = vmul.f32 %v519_v11, %v109_v42  ;;  %v162_v56 = vadd.f32 %v154_v51, %v525_v14  ;;  %v110_v58 = vadd.f32 %v531_v16, %v102_v54  ;;  %v103_v59 = vmul.f32 %v546_v22, %v576_v31 }
  0x1b   :  { %v157_v43 = vmul.f32 %v455_v13, %v108_v37  ;;  %v161_v50 = vadd.f32 %v153_v46, %v533_v17  ;;  %v106_v60 = vadd.f32 %v536_v19, %v98_v57  ;;  %v99_v61 = vmul.f32 %v554_v25, %v583_v34 }
  0x1c   :  { %75 = vrot.lane.b32.xlu1 %v562_v26, %s464_s0  ;;  %v166_v53 = vadd.f32 %v158_v49, %v540_v20  ;;  %v111_v62 = vadd.f32 %v546_v22, %v103_v59  ;;  %v159_v63 = vmul.f32 %v531_v16, %v110_v58 }
  0x1d   :  { %67 = vrot.lane.b32.xlu0 %v567_v28, %s464_s0  ;;  %v165_v48 = vadd.f32 %v157_v43, %v51_v23  ;;  %v107_v0 = vadd.f32 %v554_v25, %v99_v61  ;;  %v155_v1 = vmul.f32 %v536_v19, %v106_v60 }
  0x1e   :  { %v167_v2 = vadd.f32 %v159_v63, %v562_v26  ;;  %v160_v3 = vmul.f32 %v546_v22, %v111_v62 }
  0x1f   :  { %v163_v4 = vadd.f32 %v155_v1, %v567_v28  ;;  %v156_v5 = vmul.f32 %v554_v25, %v107_v0 }
  0x20   :  { %77 = vrot.lane.b32.xlu1 %v576_v31, %s464_s0  ;;  %v168_v6 = vadd.f32 %v160_v3, %v576_v31 }
  0x21   :  { %69 = vrot.lane.b32.xlu0 %v583_v34, %s464_s0  ;;  %v164_v7 = vadd.f32 %v156_v5, %v583_v34 }
  0x24   :  { %128 = vrot.lane.b32.xlu1 %v108_v37, %s465_s9 }
  0x25   :  { %120 = vrot.lane.b32.xlu0 %v104_v39, %s465_s9 }
  0x28   :  { %130 = vrot.lane.b32.xlu1 %v109_v42, %s465_s9 }
  0x29   :  { %122 = vrot.lane.b32.xlu0 %v105_v45, %s465_s9 }
  0x2c   :  { %185 = vrot.lane.b32.xlu1 %v165_v48, %s466_s16 }
  0x2d   :  { %177 = vrot.lane.b32.xlu0 %v161_v50, %s466_s16 }
  0x30   :  { %187 = vrot.lane.b32.xlu1 %v166_v53, %s466_s16 }
  0x31   :  { %179 = vrot.lane.b32.xlu0 %v162_v56, %s466_s16 }
  0x34   :  { %132 = vrot.lane.b32.xlu1 %v110_v58, %s465_s9 }
  0x35   :  { %124 = vrot.lane.b32.xlu0 %v106_v60, %s465_s9 }
  0x38   :  { %134 = vrot.lane.b32.xlu1 %v111_v62, %s465_s9 }
  0x39   :  { %126 = vrot.lane.b32.xlu0 %v107_v0, %s465_s9 }
  0x3c   :  { %189 = vrot.lane.b32.xlu1 %v167_v2, %s466_s16 }
  0x3d   :  { %181 = vrot.lane.b32.xlu0 %v163_v4, %s466_s16 }
  0x40   :  { %191 = vrot.lane.b32.xlu1 %v168_v6, %s466_s16 }
  0x41   :  { %183 = vrot.lane.b32.xlu0 %v164_v7, %s466_s16 }
  0x86   :  { %v66_v8 = vpop.permute.xlu1 %65 }
  0x87   :  { %89 = vst.msk [vmem:[#allocation2 + $0x8] sm:$0xff] %vm87_vm1, %v66_v8  ;;  %v64_v9 = vpop.permute.xlu0 %63 }
  0x88   :  { %88 = vst.msk [vmem:[#allocation2] sm:$0xff] %vm87_vm1, %v64_v9 }
  0x8a   :  { %v74_v10 = vpop.permute.xlu1 %73 }
  0x8b   :  { %93 = vst.msk [vmem:[#allocation2 + $0x28] sm:$0xff] %vm87_vm1, %v74_v10  ;;  %v72_v11 = vpop.permute.xlu0 %71 }
  0x8c   :  { %92 = vst.msk [vmem:[#allocation2 + $0x20] sm:$0xff] %vm87_vm1, %v72_v11 }
  0x8e   :  { %v76_v12 = vpop.permute.xlu1 %75 }
  0x8f   :  { %94 = vst.msk [vmem:[#allocation2 + $0x30] sm:$0xff] %vm87_vm1, %v76_v12  ;;  %v68_v13 = vpop.permute.xlu0 %67 }
  0x90   :  { %90 = vst.msk [vmem:[#allocation2 + $0x10] sm:$0xff] %vm87_vm1, %v68_v13 }
  0x92   :  { %v78_v14 = vpop.permute.xlu1 %77 }
  0x93   :  { %95 = vst.msk [vmem:[#allocation2 + $0x38] sm:$0xff] %vm87_vm1, %v78_v14  ;;  %v70_v15 = vpop.permute.xlu0 %69 }
  0x94   :  { %91 = vst.msk [vmem:[#allocation2 + $0x18] sm:$0xff] %vm87_vm1, %v70_v15 }
  0x96   :  { %v129_v16 = vpop.permute.xlu1 %128 }
  0x97   :  { %149 = vst.msk [vmem:[#allocation2 + $0x20] sm:$0xff] %vm144_vm2, %v129_v16  ;;  %v121_v17 = vpop.permute.xlu0 %120 }
  0x98   :  { %145 = vst.msk [vmem:[#allocation2] sm:$0xff] %vm144_vm2, %v121_v17 }
  0x9a   :  { %v131_v18 = vpop.permute.xlu1 %130 }
  0x9b   :  { %150 = vst.msk [vmem:[#allocation2 + $0x28] sm:$0xff] %vm144_vm2, %v131_v18  ;;  %v123_v19 = vpop.permute.xlu0 %122 }
  0x9c   :  { %146 = vst.msk [vmem:[#allocation2 + $0x8] sm:$0xff] %vm144_vm2, %v123_v19 }
  0x9e   :  { %v186_v20 = vpop.permute.xlu1 %185 }
  0x9f   :  { %206 = vst.msk [vmem:[#allocation2 + $0x20] sm:$0xff] %vm201_vm3, %v186_v20  ;;  %v178_v21 = vpop.permute.xlu0 %177 }
  0xa0   :  { %202 = vst.msk [vmem:[#allocation2] sm:$0xff] %vm201_vm3, %v178_v21 }
  0xa2   :  { %v188_v22 = vpop.permute.xlu1 %187 }
  0xa3   :  { %207 = vst.msk [vmem:[#allocation2 + $0x28] sm:$0xff] %vm201_vm3, %v188_v22  ;;  %v180_v23 = vpop.permute.xlu0 %179 }
  0xa4   :  { %203 = vst.msk [vmem:[#allocation2 + $0x8] sm:$0xff] %vm201_vm3, %v180_v23 }
  0xa6   :  { %v133_v24 = vpop.permute.xlu1 %132  ;;  %v214_v25 = vld [vmem:[#allocation2 + $0x20] sm:$0xff] }
  0xa7   :  { %151 = vst.msk [vmem:[#allocation2 + $0x30] sm:$0xff] %vm144_vm2, %v133_v24  ;;  %v125_v26 = vpop.permute.xlu0 %124  ;;  %v210_v27 = vld [vmem:[#allocation2] sm:$0xff]  ;;  %423 = vmatprep.mubr.msk.f32.mxu1 %vm233_vm4, %v214_v25 }
  0xa8   :  { %147 = vst.msk [vmem:[#allocation2 + $0x10] sm:$0xff] %vm144_vm2, %v125_v26  ;;  %417 = vmatprep.mubr.msk.f32.mxu0 %vm233_vm4, %v210_v27 }
  0xaa   :  { %v135_v28 = vpop.permute.xlu1 %134  ;;  %v215_v29 = vld [vmem:[#allocation2 + $0x28] sm:$0xff] }
  0xab   :  { %152 = vst.msk [vmem:[#allocation2 + $0x38] sm:$0xff] %vm144_vm2, %v135_v28  ;;  %v127_v30 = vpop.permute.xlu0 %126  ;;  %v211_v31 = vld [vmem:[#allocation2 + $0x8] sm:$0xff]  ;;  %424 = vmatmul.mubr.msk.f32.vlgmr.msra.gmra.mxu1 %vm233_vm4, %v215_v29 }
  0xac   :  { %148 = vst.msk [vmem:[#allocation2 + $0x18] sm:$0xff] %vm144_vm2, %v127_v30  ;;  %418 = vmatmul.mubr.msk.f32.vlgmr.msra.gmra.mxu0 %vm233_vm4, %v211_v31 }
  0xae   :  { %v190_v32 = vpop.permute.xlu1 %189 }
  0xaf   :  { %208 = vst.msk [vmem:[#allocation2 + $0x30] sm:$0xff] %vm201_vm3, %v190_v32  ;;  %v182_v33 = vpop.permute.xlu0 %181 }
  0xb0   :  { %204 = vst.msk [vmem:[#allocation2 + $0x10] sm:$0xff] %vm201_vm3, %v182_v33 }
  0xb2   :  { %v192_v34 = vpop.permute.xlu1 %191 }
  0xb3   :  { %209 = vst.msk [vmem:[#allocation2 + $0x38] sm:$0xff] %vm201_vm3, %v192_v34  ;;  %v184_v35 = vpop.permute.xlu0 %183 }
  0xb4   :  { %205 = vst.msk [vmem:[#allocation2 + $0x18] sm:$0xff] %vm201_vm3, %v184_v35 }
  0xb6   :  { %v216_v36 = vld [vmem:[#allocation2 + $0x30] sm:$0xff] }
  0xb7   :  { %v212_v37 = vld [vmem:[#allocation2 + $0x10] sm:$0xff]  ;;  %426 = vmatprep.mubr.msk.f32.mxu1 %vm233_vm4, %v216_v36 }
  0xb8   :  { %420 = vmatprep.mubr.msk.f32.mxu0 %vm233_vm4, %v212_v37 }
  0xba   :  { %v217_v38 = vld [vmem:[#allocation2 + $0x38] sm:$0xff] }
  0xbb   :  { %v213_v39 = vld [vmem:[#allocation2 + $0x18] sm:$0xff]  ;;  %427 = vmatmul.mubr.msk.f32.gmra.mxu1 %vm233_vm4, %v217_v38 }
  0xbc   :  { %421 = vmatmul.mubr.msk.f32.gmra.mxu0 %vm233_vm4, %v213_v39 }
 0x16b   :  { %v425_v41 = vpop.f32.mrf.mxu1 }
 0x16c   :  { %v419_v42 = vpop.f32.mrf.mxu0  ;;  %v350_v43 = vadd.f32 %v425_v41, %v376_v40 }
 0x16d   :  { %v330_v44 = vadd.f32 %v419_v42, %v376_v40  ;;  %v344_v45 = vpop.f32.mrf.mxu1 }
 0x16e   :  { %369 = vst.msk [vmem:[%s728_s3 + $0x28] sm:$0xff] %vm363_vm5, %v350_v43  ;;  %v324_v46 = vpop.f32.mrf.mxu0  ;;  %v345_v47 = vadd.f32 %v376_v40, %v344_v45 }
 0x16f   :  { %365 = vst.msk [vmem:[%s728_s3 + $0x8] sm:$0xff] %vm363_vm5, %v330_v44  ;;  %v325_v48 = vadd.f32 %v376_v40, %v324_v46 }
 0x170   :  { %368 = vst.msk [vmem:[%s728_s3 + $0x20] sm:$0xff] %vm363_vm5, %v345_v47 }
 0x171   :  { %364 = vst.msk [vmem:[%s728_s3] sm:$0xff] %vm363_vm5, %v325_v48 }
 0x17b   :  { %v428_v49 = vpop.f32.mrf.mxu1 }
 0x17c   :  { %v422_v50 = vpop.f32.mrf.mxu0  ;;  %v360_v51 = vadd.f32 %v428_v49, %v376_v40 }
 0x17d   :  { %v340_v52 = vadd.f32 %v422_v50, %v376_v40  ;;  %v354_v53 = vpop.f32.mrf.mxu1 }
 0x17e   :  { %371 = vst.msk [vmem:[%s728_s3 + $0x38] sm:$0xff] %vm363_vm5, %v360_v51  ;;  %v334_v54 = vpop.f32.mrf.mxu0  ;;  %v355_v55 = vadd.f32 %v376_v40, %v354_v53 }
 0x17f   :  { %367 = vst.msk [vmem:[%s728_s3 + $0x18] sm:$0xff] %vm363_vm5, %v340_v52  ;;  %v335_v56 = vadd.f32 %v376_v40, %v334_v54 }
 0x180   :  { %370 = vst.msk [vmem:[%s728_s3 + $0x30] sm:$0xff] %vm363_vm5, %v355_v55 }
 0x181   :  { %366 = vst.msk [vmem:[%s728_s3 + $0x10] sm:$0xff] %vm363_vm5, %v335_v56 }

</bundles_post_ra>
